<compile_context>
chip_gen: v6e
topology: v6e:2x2x1
jax: 0.10.0
libtpu: 0.0.40
codegen_flags: <defaults>
</compile_context>

<pallas_src>
import jax
import jax.numpy as jnp
from jax.experimental import pallas as pl
from jax.experimental.pallas import tpu as pltpu


def _resnet_kernel(x_ref, w1_ref, b1_ref, w2_ref, b2_ref, o_ref):
    # x streams in bf16; MXU matmuls use bf16 operands with f32 accumulation.
    xb = x_ref[...]                                               # [TM, U] bf16

    # dense1 -> bias + tanh in f32.
    h = jnp.dot(xb, w1_ref[...], preferred_element_type=jnp.float32)
    h = jnp.tanh(h + b1_ref[...])

    # dense2 (bf16 operands, f32 accumulate).
    out = jnp.dot(h.astype(jnp.bfloat16), w2_ref[...],
                  preferred_element_type=jnp.float32)

    # Residual re-read from the VMEM-resident input tile (keeps live ranges short).
    out = out + b2_ref[...] + x_ref[...].astype(jnp.float32)
    o_ref[...] = jnp.tanh(out).astype(o_ref.dtype)


def _pick_batch_tile(B: int, target: int = 512) -> int:
    """Largest multiple-of-8 tile dividing B with >=2 grid steps (even preferred)."""
    if B < 16 or B % 8 != 0:
        return B                    # tiny / irregular batch: single full-extent tile
    start = max(8, min(target, B // 2))
    start -= start % 8
    for want_even in (True, False):
        tm = start
        while tm >= 8:
            if B % tm == 0:
                n = B // tm
                if n >= 2 and (not want_even or n % 2 == 0):
                    return tm
            tm -= 8
    return B


_V7X_SAFE_VMEM = 48 << 20           # usable per-TC budget on v7x (64 MiB physical)


def _vmem_estimate(tm: int, U: int) -> int:
    wbytes = 2 * U * U * 2          # w1 + w2 bf16, single-buffered (Buffered(1))
    bbytes = 2 * U * 4              # biases f32, single-buffered
    xbytes = 2 * tm * U * 2         # x bf16, double-buffered
    obytes = 2 * tm * U * 2         # out bf16, double-buffered
    fbytes = 2 * tm * U * 4         # f32 intermediates (h / acc)
    return int((wbytes + bbytes + xbytes + obytes + fbytes) * 1.5) + (2 << 20)


def _resident_spec(shape):
    """Grid-invariant block: single buffer saves VMEM (weights never change index)."""
    try:
        return pl.BlockSpec(shape, lambda i: (0, 0), pipeline_mode=pl.Buffered(1))
    except (TypeError, ValueError):     # older jax without pipeline_mode kwarg
        return pl.BlockSpec(shape, lambda i: (0, 0))


def resnet_forward(x, w1, b1, w2, b2):
    """x: [B, U] bf16; w1,w2: [U, U] bf16 (layout [in, out]); b1,b2: [1, U] f32."""
    B, U = x.shape
    tm = _pick_batch_tile(B)

    # Shrink the batch tile if the VMEM estimate exceeds the v7x per-TC budget.
    while tm > 8 and B % tm == 0 and _vmem_estimate(tm, U) > _V7X_SAFE_VMEM:
        new = tm - 8
        while new > 8 and B % new != 0:
            new -= 8
        if new < 8 or B % new != 0:
            break
        tm = new
    n_tiles = B // tm if B % tm == 0 else 1
    if B % tm != 0:
        tm = B

    vmem_bytes = min(max(_vmem_estimate(tm, U), 16 << 20), 96 << 20)

    out_itemsize = jnp.dtype(jnp.bfloat16).itemsize
    cost = pl.CostEstimate(
        flops=2 * 2 * B * U * U,                     # two U x U matmuls over the batch
        transcendentals=2 * B * U,                   # two tanh passes
        bytes_accessed=(x.size * x.dtype.itemsize
                        + w1.size * w1.dtype.itemsize
                        + w2.size * w2.dtype.itemsize
                        + b1.size * b1.dtype.itemsize
                        + b2.size * b2.dtype.itemsize
                        + B * U * out_itemsize),     # output (bf16)
    )

    return pl.pallas_call(
        _resnet_kernel,
        out_shape=jax.ShapeDtypeStruct((B, U), jnp.bfloat16),
        grid_spec=pltpu.PrefetchScalarGridSpec(
            num_scalar_prefetch=0,
            grid=(n_tiles,),
            in_specs=[
                pl.BlockSpec((tm, U), lambda i: (i, 0)),   # x: streamed, double-buffered
                _resident_spec((U, U)),                    # w1: resident, single-buffered
                _resident_spec((1, U)),                    # b1: resident
                _resident_spec((U, U)),                    # w2: resident
                _resident_spec((1, U)),                    # b2: resident
            ],
            out_specs=pl.BlockSpec((tm, U), lambda i: (i, 0)),
        ),
        compiler_params=pltpu.CompilerParams(
            dimension_semantics=("parallel",),             # megacore sharding on v7x
            vmem_limit_bytes=vmem_bytes,
        ),
        cost_estimate=cost,
    )(x, w1, b1, w2, b2)


def reference_forward(x, w1, b1, w2, b2):
    """Pure-JAX reference with the same bf16-operand / f32-accumulate numerics."""
    h = jnp.tanh(jnp.dot(x, w1, preferred_element_type=jnp.float32) + b1)
    out = jnp.dot(h.astype(jnp.bfloat16), w2, preferred_element_type=jnp.float32)
    out = jnp.tanh(out + b2 + x.astype(jnp.float32))
    return out.astype(jnp.bfloat16)


if __name__ == "__main__":
    # Lane-dense shapes: units multiple of 128, batch multiple of 8.
    # B=512 -> tm=256, n_tiles=2 (even): pipelined DMA overlap + v7x megacore split.
    batch, units = 512, 128

    key = jax.random.PRNGKey(0)
    kx, kw1, kb1, kw2, kb2 = jax.random.split(key, 5)
    bound = 1.0 / jnp.sqrt(units)

    # nn.Linear stores weight as [out, in]; transpose to [in, out] so the kernel
    # computes plain x @ W + b (== PyTorch x @ W.T + b). Weights in bf16 for the MXU.
    x = jax.random.normal(kx, (batch, units), dtype=jnp.float32).astype(jnp.bfloat16)
    w1 = jax.random.uniform(kw1, (units, units), jnp.float32, -bound, bound).T.astype(jnp.bfloat16)
    b1 = jax.random.uniform(kb1, (1, units), jnp.float32, -bound, bound)
    w2 = jax.random.uniform(kw2, (units, units), jnp.float32, -bound, bound).T.astype(jnp.bfloat16)
    b2 = jax.random.uniform(kb2, (1, units), jnp.float32, -bound, bound)

    out = jax.block_until_ready(resnet_forward(x, w1, b1, w2, b2))
    ref = reference_forward(x, w1, b1, w2, b2)

    assert out.shape == (batch, units) and out.dtype == jnp.bfloat16
    assert jnp.allclose(out.astype(jnp.float32), ref.astype(jnp.float32),
                        atol=2e-2, rtol=2e-2), "mismatch vs reference"

    print("KERNEL_OK")
</pallas_src>

<mosaic_0001>
module attributes {stable_mosaic.version = 11 : i64} {
  func.func @_resnet_kernel(%arg0: i32, %arg1: memref<256x128xbf16, #tpu.memory_space<vmem>>, %arg2: memref<128x128xbf16, #tpu.memory_space<vmem>>, %arg3: memref<1x128xf32, #tpu.memory_space<vmem>>, %arg4: memref<128x128xbf16, #tpu.memory_space<vmem>>, %arg5: memref<1x128xf32, #tpu.memory_space<vmem>>, %arg6: memref<256x128xbf16, #tpu.memory_space<vmem>>) attributes {dimension_semantics = [#tpu.dimension_semantics<parallel>], iteration_bounds = array<i64: 2>, scalar_prefetch = 0 : i64, scratch_operands = 0 : i64, tpu.core_type = #tpu.core_type<tc>, window_params = [{transform_indices = @transform_0, window_bounds = array<i64: 256, 128>}, {pipeline_mode = #tpu.pipeline_mode<synchronous>, transform_indices = @transform_1, window_bounds = array<i64: 128, 128>}, {pipeline_mode = #tpu.pipeline_mode<synchronous>, transform_indices = @transform_2, window_bounds = array<i64: 1, 128>}, {pipeline_mode = #tpu.pipeline_mode<synchronous>, transform_indices = @transform_3, window_bounds = array<i64: 128, 128>}, {pipeline_mode = #tpu.pipeline_mode<synchronous>, transform_indices = @transform_4, window_bounds = array<i64: 1, 128>}, {transform_indices = @transform_5, window_bounds = array<i64: 256, 128>}]} {
    %c0 = arith.constant 0 : index
    %c0_0 = arith.constant 0 : index
    %0 = vector.load %arg1[%c0, %c0_0] : memref<256x128xbf16, #tpu.memory_space<vmem>>, vector<256x128xbf16>
    %c0_1 = arith.constant 0 : index
    %c0_2 = arith.constant 0 : index
    %1 = vector.load %arg2[%c0_1, %c0_2] : memref<128x128xbf16, #tpu.memory_space<vmem>>, vector<128x128xbf16>
    %cst = arith.constant dense<0.000000e+00> : vector<256x128xf32>
    %2 = tpu.matmul %0, %1, %cst {dimension_numbers = #tpu.dot_dimension_numbers<[1], [0], [0], [1], [0, 0, 1, 1], [], []>} : vector<256x128xbf16>, vector<128x128xbf16>, vector<256x128xf32> -> vector<256x128xf32>
    %c0_3 = arith.constant 0 : index
    %c0_4 = arith.constant 0 : index
    %3 = vector.load %arg3[%c0_3, %c0_4] : memref<1x128xf32, #tpu.memory_space<vmem>>, vector<1x128xf32>
    %4 = vector.broadcast %3 : vector<1x128xf32> to vector<256x128xf32>
    %5 = arith.addf %2, %4 : vector<256x128xf32>
    %6 = math.tanh %5 : vector<256x128xf32>
    %7 = arith.truncf %6 : vector<256x128xf32> to vector<256x128xbf16>
    %c0_5 = arith.constant 0 : index
    %c0_6 = arith.constant 0 : index
    %8 = vector.load %arg4[%c0_5, %c0_6] : memref<128x128xbf16, #tpu.memory_space<vmem>>, vector<128x128xbf16>
    %cst_7 = arith.constant dense<0.000000e+00> : vector<256x128xf32>
    %9 = tpu.matmul %7, %8, %cst_7 {dimension_numbers = #tpu.dot_dimension_numbers<[1], [0], [0], [1], [0, 0, 1, 1], [], []>} : vector<256x128xbf16>, vector<128x128xbf16>, vector<256x128xf32> -> vector<256x128xf32>
    %c0_8 = arith.constant 0 : index
    %c0_9 = arith.constant 0 : index
    %10 = vector.load %arg5[%c0_8, %c0_9] : memref<1x128xf32, #tpu.memory_space<vmem>>, vector<1x128xf32>
    %11 = vector.broadcast %10 : vector<1x128xf32> to vector<256x128xf32>
    %12 = arith.addf %9, %11 : vector<256x128xf32>
    %c0_10 = arith.constant 0 : index
    %c0_11 = arith.constant 0 : index
    %13 = vector.load %arg1[%c0_10, %c0_11] : memref<256x128xbf16, #tpu.memory_space<vmem>>, vector<256x128xbf16>
    %14 = arith.extf %13 : vector<256x128xbf16> to vector<256x128xf32>
    %15 = arith.addf %12, %14 : vector<256x128xf32>
    %16 = math.tanh %15 : vector<256x128xf32>
    %17 = arith.truncf %16 : vector<256x128xf32> to vector<256x128xbf16>
    %c0_12 = arith.constant 0 : index
    %c0_13 = arith.constant 0 : index
    %18 = vector.load %arg6[%c0_12, %c0_13] : memref<256x128xbf16, #tpu.memory_space<vmem>>, vector<256x128xbf16>
    tpu.vector_store %arg6[%c0_12, %c0_13], %17 {strides = array<i32>} : memref<256x128xbf16, #tpu.memory_space<vmem>>, vector<256x128xbf16>,
    return
  }
  func.func @transform_0(%arg0: i32) -> (i32, i32) {
    %c0_i32 = arith.constant 0 : i32
    %c0_i32_0 = arith.constant 0 : i32
    return %arg0, %c0_i32 : i32, i32
  }
  func.func @transform_1(%arg0: i32) -> (i32, i32) {
    %c0_i32 = arith.constant 0 : i32
    %c0_i32_0 = arith.constant 0 : i32
    %c0_i32_1 = arith.constant 0 : i32
    return %c0_i32, %c0_i32_0 : i32, i32
  }
  func.func @transform_2(%arg0: i32) -> (i32, i32) {
    %c0_i32 = arith.constant 0 : i32
    %c0_i32_0 = arith.constant 0 : i32
    %c0_i32_1 = arith.constant 0 : i32
    return %c0_i32, %c0_i32_0 : i32, i32
  }
  func.func @transform_3(%arg0: i32) -> (i32, i32) {
    %c0_i32 = arith.constant 0 : i32
    %c0_i32_0 = arith.constant 0 : i32
    %c0_i32_1 = arith.constant 0 : i32
    return %c0_i32, %c0_i32_0 : i32, i32
  }
  func.func @transform_4(%arg0: i32) -> (i32, i32) {
    %c0_i32 = arith.constant 0 : i32
    %c0_i32_0 = arith.constant 0 : i32
    %c0_i32_1 = arith.constant 0 : i32
    return %c0_i32, %c0_i32_0 : i32, i32
  }
  func.func @transform_5(%arg0: i32) -> (i32, i32) {
    %c0_i32 = arith.constant 0 : i32
    %c0_i32_0 = arith.constant 0 : i32
    return %arg0, %c0_i32 : i32, i32
  }
}

</mosaic_0001>

<bundles_post_ra>
// kernel: tpu_custom_call.1
= control target key start
LH: loop header
LB: loop body
LE: loop exit
PB: predicated region body
PF: predicated region fallthrough
CT: control target
= control target key end

     0   :  { %10 = vsyncpa [#allocation3], 0  ;;  %s2461_s0 = inlined_call_operand.hbm [shape: bf16[512,128], index: 0, kind: input, shape index: {}]   ;;  %s2462_s1 = inlined_call_operand.hbm [shape: bf16[128,128], index: 1, kind: input, shape index: {}]   ;;  %s2463_s2 = inlined_call_operand.vmem [shape: f32[1,128], index: 2, kind: input, shape index: {}]   ;;  %s2464_s3 = inlined_call_operand.hbm [shape: bf16[128,128], index: 3, kind: input, shape index: {}]   ;;  %s2465_s4 = inlined_call_operand.vmem [shape: f32[1,128], index: 4, kind: input, shape index: {}]   ;;  %s2466_s5 = inlined_call_operand.hbm [shape: bf16[512,128], index: 5, kind: output, shape index: {}]  }
   0x1   :  { %12 = vsyncpa [#allocation3 + $0x1], 0 }
   0x2   :  { %13 = vsyncpa [#allocation6], 0 }
   0x3   :  { %14 = vsyncpa [#allocation4], 0 }
   0x4   :  { %16 = vsyncpa [#allocation4 + $0x1], 0  ;;  %s2069_s18 = smov 0   ;;  %s2071_s19 = smov 0  }
   0x5   :  { %s2073_s20 = smov 0   ;;  %s2075_s21 = smov 0  }
   0x6 LB: > { %s2090_s22 = sadd.s32 4294967295, %s2029_s21   ;;  %s1277_s23 = sadd.s32 4294967294, %s2029_s21   ;;  %s2029_s21 = sphi %s2075_s21, %s2489_s21   ;;  %s2025_s20 = sphi %s2073_s20, %s2488_s20   ;;  %s2021_s19 = sphi %s2071_s19, %s2487_s19   ;;  %s2017_s18 = sphi %s2069_s18, %s2486_s18  }
   0x7   : > { %p42_p0 = scmp.ne.s32.totalorder %s2021_s19, %s2017_s18  ;;  %p2467_p1 = scmp.eq.s32.totalorder %s2090_s22, 0 }
   0x8   : > { %p150_p2 = scmp.eq.s32.totalorder %s2090_s22, 1  ;;  %p156_p3 = scmp.eq.s32.totalorder %s1277_s23, 1 }
   0x9   : > { %p2099_p4 = por %p2467_p1, %p42_p0  ;;  %p1278_p5 = scmp.ge.s32.totalorder %s2029_s21, 1 }
   0xa   : > { %p2104_p6 = por %p156_p3, %p42_p0  ;;  %p163_p7 = scmp.lt.s32.totalorder %s2029_s21, 3 }
   0xb   : > { %s2472_s24 = scalar_select %p2099_p4, 1, 0 }
   0xc   : > { %s2473_s25 = scalar_select %p2104_p6, 1, 0 }
   0xd   : > { %p2109_p8 = pnand %p1278_p5, %p163_p7  ;;  %s2031_s27 = smov [#allocation5]  }
   0xe   : > { %s175_s28 = sshll.u32 %s2031_s27, 4  ;;  %s2032_s30 = smov [#allocation7]   ;;  %s176_s28 = int_to_ptr.vmem [resolvable:$true] %s175_s28 }
   0xf   : > { %s2474_s26 = scalar_select %p2109_p8, 1, 0 }
  0x10   : > { %p1646_p9 = pneg %p2109_p8  ;;  %s191_s6 = sshll.u32 %s2032_s30, 4  ;;  %s192_s6 = int_to_ptr.vmem [resolvable:$true] %s191_s6 }
  0x11   : > { %s1892_s7 = scalar_lea.vmem %s176_s28, 1024  ;;  %p1900_p5 = scmp.lt.s32.totalorder %s176_s28, %s176_s28 }
  0x12   : > { %p2118_p11 = pnand %p1646_p9, %p2467_p1  ;;  %p1893_p13 = scmp.ne.s32.totalorder %s176_s28, %s1892_s7 }
  0x13   : > { %p1901_p7 = scmp.lt.s32.totalorder %s1892_s7, %s1892_s7 }
  0x14   : > { %p1883_p12 = pneg %p2118_p11 }
  0x15   : > { %p1902_p10 = por %p1901_p7, %p1900_p5 }
  0x16   : > { %p1895_p0 = pnand %p1893_p13, %p1883_p12 }
  0x18   : > { %p1896_p3 = pneg %p1895_p0 }
  0x1a   : > { %p1903_p9 = pnand %p1902_p10, %p1896_p3 }
  0x1c   : > { %1906 = shalt.err (!%p1903_p9)
}
  0x1d   : > { %s2468_s8 = smov 64   ;;  %s2034_s9 = smov 4  }
  0x1e   : > { %1649 = dma.hbm_to_vmem [thread:$0]  (!%p2118_p11), %s2462_s1, 1024, %s176_s28, [#allocation6], %s2468_s8, %s2468_s8, %s2034_s9  }
  0x1f   : > { %s1918_s12 = scalar_lea.vmem %s192_s6, 1024  ;;  %p1926_p10 = scmp.lt.s32.totalorder %s192_s6, %s192_s6 }
  0x20   : > { %p1919_p13 = scmp.ne.s32.totalorder %s192_s6, %s1918_s12  ;;  %p1927_p3 = scmp.lt.s32.totalorder %s1918_s12, %s1918_s12 }
  0x22   : > { %p1921_p0 = pnand %p1919_p13, %p1883_p12  ;;  %p1928_p7 = por %p1927_p3, %p1926_p10 }
  0x24   : > { %p1922_p5 = pneg %p1921_p0 }
  0x26   : > { %p1929_p9 = pnand %p1928_p7, %p1922_p5 }
  0x28   : > { %1932 = shalt.err (!%p1929_p9)
}
  0x29   : > { %1652 = dma.hbm_to_vmem [thread:$0]  (!%p2118_p11), %s2464_s3, 1024, %s192_s6, [#allocation6], %s2468_s8, %s2468_s8, %s2034_s9  }
  0x2a   : > { %s2147_s15 = sadd.s32 1, %s2029_s21   ;;  %s29_s16 = sadd.s32 1, %s2025_s20 }
  0x2b   : > { %s26_s17 = ssub.s32 %s2029_s21, %s2147_s15  ;;  %p36_p12 = scmp.ne.s32.totalorder %s2025_s20, %s2021_s19 }
  0x2c   : > { %p27_p13 = scmp.eq.s32.totalorder %s26_s17, 0  ;;  %p37_p0 = scmp.eq.s32.totalorder %s2029_s21, 0 }
  0x2d   : > { %p2157_p5 = por %p150_p2, %p36_p12  ;;  %p1663_p10 = scmp.lt.s32.totalorder %s2029_s21, 2 }
  0x2e   : > { %s2163_s27 = scalar_select %p27_p13, %s2025_s20, %s29_s16  }
  0x2f   : > { %s2476_s23 = scalar_select %p2157_p5, 1, 0 }
  0x30   : > { %p38_p3 = por %p37_p0, %p36_p12  ;;  %s208_s28 = sand.u32 1, %s2025_s20  }
  0x31   : > { %s1282_s29 = sshll.u32 %s208_s28, 7  ;;  %s1361_s30 = sshll.u32 %s2029_s21, 11 }
  0x32   : > { %s2170_s10 = scalar_lea.hbm %s2461_s0, %s1361_s30  ;;  %s212_s11 = scalar_lea.vmem [#allocation2], %s1282_s29 }
  0x33   : > { %s219_s12 = sshll.u32 %s212_s11, 4  ;;  %p2174_p2 = pnand %p1663_p10, %p38_p3  ;;  %s2172_s12 = int_to_ptr.vmem [resolvable:$true] %s219_s12 }
  0x34   : > { %s2178_s14 = scalar_lea.sflag [#allocation3], %s208_s28  ;;  %s1933_s16 = scalar_lea.hbm %s2170_s10, 2048 }
  0x35   : > { %p1934_p11 = scmp.ne.s32.totalorder %s2170_s10, %s1933_s16  ;;  %p1935_p7 = pneg %p2174_p2 }
  0x36   : > { %s1938_s29 = scalar_lea.hbm %s2461_s0, 4096  ;;  %p1939_p13 = scmp.lt.s32.totalorder %s2170_s10, %s2461_s0 }
  0x37   : > { %p1936_p9 = pnand %p1935_p7, %p1934_p11  ;;  %p1940_p0 = scmp.lt.s32.totalorder %s1938_s29, %s1933_s16 }
  0x39   : > { %p1937_p12 = pneg %p1936_p9  ;;  %p1941_p10 = por %p1940_p0, %p1939_p13 }
  0x3b   : > { %p1942_p3 = pnand %p1941_p10, %p1937_p12 }
  0x3d   : > { %1945 = shalt.err (!%p1942_p3)
}
  0x3e   : > { %s1946_s28 = scalar_lea.vmem %s2172_s12, 2048  ;;  %s2035_s11 = smov [#allocation2]  }
  0x3f   : > { %p1947_p1 = scmp.ne.s32.totalorder %s2172_s12, %s1946_s28  ;;  %s1951_s8 = sshll.u32 %s2035_s11, 4  ;;  %s1952_s8 = int_to_ptr.vmem [resolvable:$false] %s1951_s8 }
  0x40   : > { %s1953_s17 = scalar_lea.vmem %s1952_s8, 4096  ;;  %p1954_p9 = scmp.lt.s32.totalorder %s2172_s12, %s1952_s8 }
  0x41   : > { %p1949_p6 = pnand %p1947_p1, %p1935_p7  ;;  %p1955_p5 = scmp.lt.s32.totalorder %s1953_s17, %s1946_s28 }
  0x43   : > { %p1950_p11 = pneg %p1949_p6  ;;  %p1956_p4 = por %p1955_p5, %p1954_p9 }
  0x45   : > { %p1957_p8 = pnand %p1956_p4, %p1950_p11 }
  0x47   : > { %1960 = shalt.err (!%p1957_p8)
}
  0x48   : > { %s2478_s16 = smov 64   ;;  %p2479_p1 = scmp.ne.s32.totalorder %s2474_s26, 0 }
  0x49   : > { %1656 = dma.hbm_to_vmem [thread:$0]  (!%p2174_p2), %s2170_s10, 2048, %s2172_s12, %s2178_s14, %s2478_s16, %s2478_s16, %s2034_s9  }
  0x4a   : > { %231 = sbr.rel (%p2479_p1) target bundleno = 623 (0x26f), region = 40  ;;  %s2205_s30 = sand.u32 (!%p2479_p1), 1, %s2021_s19  }
  0x4b   : > { %s1286_s8 = sshll.u32 (!%p2479_p1), %s2205_s30, 7  ;;  %s234_s29 = scalar_lea.sflag (!%p2479_p1), [#allocation3], %s2205_s30 }
  0x4c   : > { %s2211_s13 = scalar_lea.vmem (!%p2479_p1), [#allocation2], %s1286_s8  ;;  %p2480_p4 = scmp.ne.s32.totalorder (!%p2479_p1), %s2472_s24, 0 }
  0x4f   : > { %2004 = dma.done.wait (%p2480_p4), %s234_s29, 2048  }
  0x50   : > { %2006 = vsyncadd (%p2480_p4), %s234_s29, 4294965248  ;;  %p2481_p6 = scmp.eq.s32.totalorder %s2090_s22, 0 }
  0x52   : > { %2008 = dma.done.wait (%p2481_p6), [#allocation6], 2048   ;;  %p2482_p8 = pmov %p2481_p6 }
  0x53   : > { %v1705_v0 = vld [vmem:[#allocation5 + $0x38] sm:$0xff]   ;;  %v1706_v1 = vld [vmem:[#allocation5 + $0x30] sm:$0xff]   ;;  %v1707_v2 = vld [vmem:[#allocation5 + $0x28] sm:$0xff]   ;;  %s2354_s12 = scalar_lea.vmem [#allocation8], %s1286_s8  ;;  %s1394_s14 = sshll.u32 %s2090_s22, 11 }
  0x54   : > { %2010 = vsyncadd (%p2482_p8), [#allocation6], 4294965248  ;;  %1538 = vmatprep.subr.bf16.mxu0 %v1705_v0  ;;  %v1708_v3 = vld [vmem:[#allocation5 + $0x20] sm:$0xff]   ;;  %v1709_v5 = vld [vmem:[#allocation5 + $0x18] sm:$0xff]   ;;  %s1185_s6 = sshll.u32 %s2354_s12, 4  ;;  %s2414_s11 = scalar_lea.hbm %s2466_s5, %s1394_s14  ;;  %s2416_s6 = int_to_ptr.vmem [resolvable:$true] %s1185_s6 }
  0x55   : > { %1539 = vmatpush3.bf16.msra.mxu0 %v1705_v0  ;;  %v2222_v4 = vld [vmem:[%s2211_s13] sm:$0xff]   ;;  %v1710_v6 = vld [vmem:[#allocation5 + $0x10] sm:$0xff]   ;;  %v1729_v7 = vld [vmem:[#allocation7 + $0x38] sm:$0xff]   ;;  %s1172_s17 = scalar_lea.sflag [#allocation4], %s2205_s30  ;;  %s1961_s22 = scalar_lea.vmem %s2416_s6, 2048 }
  0x56   : > { %1540 = vmatprep.subr.bf16.mxu0 %v1706_v1  ;;  %1554 = vmatprep.mubr.bf16.mxu0 %v2222_v4  ;;  %v1730_v8 = vld [vmem:[#allocation7 + $0x30] sm:$0xff]   ;;  %v1711_v9 = vld [vmem:[#allocation5 + $0x8] sm:$0xff]   ;;  %v1712_v10 = vld [vmem:[#allocation5] sm:$0xff]   ;;  %p1962_p5 = scmp.ne.s32.totalorder %s2416_s6, %s1961_s22  ;;  %p2483_p2 = scmp.ne.s32.totalorder %s2476_s23, 0 }
  0x57   : > { %1586 = vmatprep.subr.bf16.mxu1 %v1729_v7  ;;  %v2226_v11 = vld [vmem:[%s2211_s13 + $0x8] sm:$0xff]   ;;  %v2229_v12 = vld [vmem:[%s2211_s13 + $0x10] sm:$0xff]   ;;  %v2234_v13 = vld [vmem:[%s2211_s13 + $0x18] sm:$0xff]   ;;  %s2036_s16 = smov [#allocation8]  }
  0x58   : > { %1587 = vmatpush3.bf16.msra.mxu1 %v1729_v7  ;;  %v2237_v14 = vld [vmem:[%s2211_s13 + $0x20] sm:$0xff]   ;;  %v2242_v15 = vld [vmem:[%s2211_s13 + $0x28] sm:$0xff]   ;;  %v2245_v16 = vld [vmem:[%s2211_s13 + $0x30] sm:$0xff]   ;;  %p1963_p7 = pnand %p1962_p5, %p2483_p2  ;;  %s1965_s8 = sshll.u32 %s2036_s16, 4  ;;  %s1966_s8 = int_to_ptr.vmem [resolvable:$false] %s1965_s8 }
  0x59   : > { %1541 = vmatpush3.bf16.msra.mxu0 %v1706_v1  ;;  %1588 = vmatprep.subr.bf16.mxu1 %v1730_v8  ;;  %v2250_v17 = vld [vmem:[%s2211_s13 + $0x38] sm:$0xff]   ;;  %v2253_v18 = vld [vmem:[%s2211_s13 + $0x40] sm:$0xff]   ;;  %v2258_v19 = vld [vmem:[%s2211_s13 + $0x48] sm:$0xff]   ;;  %s1967_s29 = scalar_lea.vmem %s1966_s8, 4096  ;;  %p1968_p13 = scmp.lt.s32.totalorder %s2416_s6, %s1966_s8 }
  0x5a   : > { %1542 = vmatprep.subr.bf16.mxu0 %v1707_v2  ;;  %v2261_v20 = vld [vmem:[%s2211_s13 + $0x50] sm:$0xff]   ;;  %v2266_v21 = vld [vmem:[%s2211_s13 + $0x58] sm:$0xff]   ;;  %v2269_v22 = vld [vmem:[%s2211_s13 + $0x60] sm:$0xff]   ;;  %p1964_p12 = pneg %p1963_p7  ;;  %p1969_p0 = scmp.lt.s32.totalorder %s1967_s29, %s1961_s22 }
  0x5b   : > { %v2274_v23 = vld [vmem:[%s2211_s13 + $0x68] sm:$0xff]   ;;  %v2277_v24 = vld [vmem:[%s2211_s13 + $0x70] sm:$0xff]   ;;  %v2282_v25 = vld [vmem:[%s2211_s13 + $0x78] sm:$0xff]  }
  0x5c   : > { %1589 = vmatpush3.bf16.msra.mxu1 %v1730_v8  ;;  %v1731_v26 = vld [vmem:[#allocation7 + $0x28] sm:$0xff]   ;;  %v1732_v27 = vld [vmem:[#allocation7 + $0x20] sm:$0xff]   ;;  %v1733_v28 = vld [vmem:[#allocation7 + $0x18] sm:$0xff]   ;;  %p1970_p10 = por %p1969_p0, %p1968_p13 }
  0x5d   : > { %1543 = vmatpush3.bf16.msra.mxu0 %v1707_v2  ;;  %1590 = vmatprep.subr.bf16.mxu1 %v1731_v26  ;;  %v1734_v29 = vld [vmem:[#allocation7 + $0x10] sm:$0xff]   ;;  %v1735_v30 = vld [vmem:[#allocation7 + $0x8] sm:$0xff]   ;;  %v1736_v31 = vld [vmem:[#allocation7] sm:$0xff]  }
  0x5e   : > { %1544 = vmatprep.subr.bf16.mxu0 %v1708_v3  ;;  %v2288_v33 = vld [vmem:[%s2463_s2] ss:$0 sm:$0xff]  ;;  %p1971_p3 = pnand %p1970_p10, %p1964_p12 }
  0x60   : > { %1591 = vmatpush3.bf16.msra.mxu1 %v1731_v26 }
  0x61   : > { %1545 = vmatpush3.bf16.msra.mxu0 %v1708_v3  ;;  %1592 = vmatprep.subr.bf16.mxu1 %v1732_v27 }
  0x62   : > { %1546 = vmatprep.subr.bf16.mxu0 %v1709_v5 }
  0x64   : > { %1593 = vmatpush3.bf16.msra.mxu1 %v1732_v27 }
  0x65   : > { %1547 = vmatpush3.bf16.msra.mxu0 %v1709_v5  ;;  %1594 = vmatprep.subr.bf16.mxu1 %v1733_v28 }
  0x66   : > { %1548 = vmatprep.subr.bf16.mxu0 %v1710_v6 }
  0x68   : > { %1595 = vmatpush3.bf16.msra.mxu1 %v1733_v28 }
  0x69   : > { %1549 = vmatpush3.bf16.msra.mxu0 %v1710_v6  ;;  %1596 = vmatprep.subr.bf16.mxu1 %v1734_v29 }
  0x6a   : > { %1550 = vmatprep.subr.bf16.mxu0 %v1711_v9 }
  0x6c   : > { %1597 = vmatpush3.bf16.msra.mxu1 %v1734_v29 }
  0x6d   : > { %1551 = vmatpush3.bf16.msra.mxu0 %v1711_v9  ;;  %1598 = vmatprep.subr.bf16.mxu1 %v1735_v30 }
  0x6e   : > { %1552 = vmatprep.subr.bf16.mxu0 %v1712_v10 }
  0x70   : > { %1599 = vmatpush3.bf16.msra.mxu1 %v1735_v30 }
  0x71   : > { %1553 = vmatpush3.bf16.msra.mxu0 %v1712_v10  ;;  %1600 = vmatprep.subr.bf16.mxu1 %v1736_v31 }
  0x74   : > { %1555 = vmatmul.mubr.bf16.vlgmr.msra.gmra.mxu0 %v2226_v11  ;;  %1601 = vmatpush3.bf16.msra.mxu1 %v1736_v31 }
  0x75   : > { %1558 = vmatprep.mubr.bf16.mxu0 %v2229_v12 }
  0x7c   : > { %1559 = vmatmul.mubr.bf16.gmra.mxu0 %v2234_v13 }
  0x7d   : > { %1562 = vmatprep.mubr.bf16.mxu0 %v2237_v14 }
  0x84   : > { %1563 = vmatmul.mubr.bf16.gmra.mxu0 %v2242_v15 }
  0x85   : > { %1566 = vmatprep.mubr.bf16.mxu0 %v2245_v16 }
  0x8c   : > { %1567 = vmatmul.mubr.bf16.gmra.mxu0 %v2250_v17 }
  0x8d   : > { %1570 = vmatprep.mubr.bf16.mxu0 %v2253_v18 }
  0x94   : > { %1571 = vmatmul.mubr.bf16.gmra.mxu0 %v2258_v19 }
  0x95   : > { %1574 = vmatprep.mubr.bf16.mxu0 %v2261_v20 }
  0x9c   : > { %1575 = vmatmul.mubr.bf16.gmra.mxu0 %v2266_v21 }
  0x9d   : > { %1578 = vmatprep.mubr.bf16.mxu0 %v2269_v22 }
  0xa4   : > { %1579 = vmatmul.mubr.bf16.gmra.mxu0 %v2274_v23 }
  0xa5   : > { %1582 = vmatprep.mubr.bf16.mxu0 %v2277_v24 }
  0xac   : > { %1583 = vmatmul.mubr.bf16.gmra.mxu0 %v2282_v25 }
 0x134   : > { %v1556_v32 = vpop.f32.mrf.mxu0 }
 0x135   : > { %v517_v38 = vadd.f32 %v1556_v32, %v2288_v33 }
 0x136   : > { %v508_v34 = vpop.f32.mrf.mxu0 }
 0x137   : > { %v509_v35 = vadd.f32 %v2288_v33, %v508_v34 }
 0x138   : > { %v1557_v36 = vpop.f32.mrf.mxu0 }
 0x139   : > { %v520_v37 = vadd.f32 %v1557_v36, %v2288_v33  ;;  %1753 = vtanh.f32 %v509_v35 }
 0x13a   : > { %v511_v39 = vpop.f32.mrf.mxu0 }
 0x13b   : > { %v512_v40 = vadd.f32 %v2288_v33, %v511_v39  ;;  %1755 = vtanh.f32 %v520_v37 }
 0x13c   : > { %v1560_v41 = vpop.f32.mrf.mxu0 }
 0x13d   : > { %1757 = vtanh.f32 %v512_v40  ;;  %v533_v46 = vadd.f32 %v1560_v41, %v2288_v33 }
 0x13e   : > { %1759 = vtanh.f32 %v517_v38  ;;  %v524_v42 = vpop.f32.mrf.mxu0 }
 0x13f   : > { %v525_v43 = vadd.f32 %v2288_v33, %v524_v42 }
 0x140   : > { %v1561_v44 = vpop.f32.mrf.mxu0 }
 0x141   : > { %v536_v45 = vadd.f32 %v1561_v44, %v2288_v33  ;;  %1761 = vtanh.f32 %v525_v43 }
 0x142   : > { %v527_v47 = vpop.f32.mrf.mxu0 }
 0x143   : > { %v528_v48 = vadd.f32 %v2288_v33, %v527_v47  ;;  %1763 = vtanh.f32 %v536_v45 }
 0x144   : > { %v1564_v49 = vpop.f32.mrf.mxu0 }
 0x145   : > { %1765 = vtanh.f32 %v528_v48  ;;  %v549_v57 = vadd.f32 %v1564_v49, %v2288_v33 }
 0x146   : > { %1767 = vtanh.f32 %v533_v46  ;;  %v540_v50 = vpop.f32.mrf.mxu0  ;;  %v1754_v52 = vpop.eup %1753 }
 0x147   : > { %v541_v51 = vadd.f32 %v2288_v33, %v540_v50 }
 0x148   : > { %v1565_v53 = vpop.f32.mrf.mxu0  ;;  %v1756_v54 = vpop.eup %1755 }
 0x149   : > { %v552_v55 = vadd.f32 %v1565_v53, %v2288_v33  ;;  %1769 = vtanh.f32 %v541_v51 }
 0x14a   : > { %v1758_v56 = vpop.eup %1757  ;;  %v543_v58 = vpop.f32.mrf.mxu0 }
 0x14b   : > { %v1760_v59 = vpop.eup %1759  ;;  %v544_v60 = vadd.f32 %v2288_v33, %v543_v58  ;;  %v667_v61 = vpack.c.bf16 %v1758_v56, %v1754_v52  ;;  %1771 = vtanh.f32 %v552_v55 }
 0x14c   : > { %v1568_v62 = vpop.f32.mrf.mxu0  ;;  %v668_v63 = vpack.c.bf16 %v1756_v54, %v1760_v59 }
 0x14d   : > { %1773 = vtanh.f32 %v544_v60  ;;  %1602 = vmatprep.mubr.bf16.mxu1 %v667_v61  ;;  %v565_v8 = vadd.f32 %v1568_v62, %v2288_v33 }
 0x14e   : > { %1775 = vtanh.f32 %v549_v57  ;;  %v556_v0 = vpop.f32.mrf.mxu0  ;;  %1603 = vmatmul.mubr.bf16.vlgmr.msra.gmra.mxu1 %v668_v63  ;;  %v1762_v2 = vpop.eup %1761 }
 0x14f   : > { %v557_v1 = vadd.f32 %v2288_v33, %v556_v0 }
 0x150   : > { %v1569_v3 = vpop.f32.mrf.mxu0  ;;  %v1764_v5 = vpop.eup %1763 }
 0x151   : > { %v568_v6 = vadd.f32 %v1569_v3, %v2288_v33  ;;  %1777 = vtanh.f32 %v557_v1 }
 0x152   : > { %v1766_v7 = vpop.eup %1765  ;;  %v559_v9 = vpop.f32.mrf.mxu0 }
 0x153   : > { %v1768_v10 = vpop.eup %1767  ;;  %v560_v26 = vadd.f32 %v2288_v33, %v559_v9  ;;  %v669_v27 = vpack.c.bf16 %v1766_v7, %v1762_v2  ;;  %1779 = vtanh.f32 %v568_v6 }
 0x154   : > { %v1572_v28 = vpop.f32.mrf.mxu0  ;;  %v670_v29 = vpack.c.bf16 %v1764_v5, %v1768_v10 }
 0x155   : > { %1781 = vtanh.f32 %v560_v26  ;;  %1606 = vmatprep.mubr.bf16.mxu1 %v669_v27  ;;  %v581_v38 = vadd.f32 %v1572_v28, %v2288_v33 }
 0x156   : > { %1783 = vtanh.f32 %v565_v8  ;;  %v572_v30 = vpop.f32.mrf.mxu0  ;;  %1607 = vmatmul.mubr.bf16.gmra.mxu1 %v670_v29  ;;  %v1770_v32 = vpop.eup %1769 }
 0x157   : > { %v573_v31 = vadd.f32 %v2288_v33, %v572_v30 }
 0x158   : > { %v1573_v34 = vpop.f32.mrf.mxu0  ;;  %v1772_v35 = vpop.eup %1771 }
 0x159   : > { %v584_v36 = vadd.f32 %v1573_v34, %v2288_v33  ;;  %1785 = vtanh.f32 %v573_v31 }
 0x15a   : > { %v1774_v37 = vpop.eup %1773  ;;  %v575_v39 = vpop.f32.mrf.mxu0 }
 0x15b   : > { %v1776_v40 = vpop.eup %1775  ;;  %v576_v41 = vadd.f32 %v2288_v33, %v575_v39  ;;  %v671_v42 = vpack.c.bf16 %v1774_v37, %v1770_v32  ;;  %1787 = vtanh.f32 %v584_v36 }
 0x15c   : > { %v1576_v43 = vpop.f32.mrf.mxu0  ;;  %v672_v44 = vpack.c.bf16 %v1772_v35, %v1776_v40 }
 0x15d   : > { %1789 = vtanh.f32 %v576_v41  ;;  %1610 = vmatprep.mubr.bf16.mxu1 %v671_v42  ;;  %v597_v52 = vadd.f32 %v1576_v43, %v2288_v33 }
 0x15e   : > { %1791 = vtanh.f32 %v581_v38  ;;  %v588_v45 = vpop.f32.mrf.mxu0  ;;  %1611 = vmatmul.mubr.bf16.gmra.mxu1 %v672_v44  ;;  %v1778_v47 = vpop.eup %1777 }
 0x15f   : > { %v589_v46 = vadd.f32 %v2288_v33, %v588_v45 }
 0x160   : > { %v1577_v48 = vpop.f32.mrf.mxu0  ;;  %v1780_v49 = vpop.eup %1779 }
 0x161   : > { %v600_v50 = vadd.f32 %v1577_v48, %v2288_v33  ;;  %1793 = vtanh.f32 %v589_v46 }
 0x162   : > { %v1782_v51 = vpop.eup %1781  ;;  %v591_v53 = vpop.f32.mrf.mxu0 }
 0x163   : > { %v1784_v54 = vpop.eup %1783  ;;  %v592_v55 = vadd.f32 %v2288_v33, %v591_v53  ;;  %v673_v56 = vpack.c.bf16 %v1782_v51, %v1778_v47  ;;  %1795 = vtanh.f32 %v600_v50  ;;  %v2325_v50 = vld [vmem:[%s2465_s4] ss:$0 sm:$0xff] }
 0x164   : > { %v1580_v57 = vpop.f32.mrf.mxu0  ;;  %v674_v58 = vpack.c.bf16 %v1780_v49, %v1784_v54  ;;  %v915_v54 = vunpack.c.l.bf16 %v2222_v4 }
 0x165   : > { %1797 = vtanh.f32 %v592_v55  ;;  %1614 = vmatprep.mubr.bf16.mxu1 %v673_v56  ;;  %v613_v2 = vadd.f32 %v1580_v57, %v2288_v33  ;;  %v918_v57 = vunpack.c.h.bf16 %v2226_v11 }
 0x166   : > { %1799 = vtanh.f32 %v597_v52  ;;  %v604_v59 = vpop.f32.mrf.mxu0  ;;  %1615 = vmatmul.mubr.bf16.gmra.mxu1 %v674_v58  ;;  %v1786_v61 = vpop.eup %1785  ;;  %v917_v52 = vunpack.c.l.bf16 %v2226_v11 }
 0x167   : > { %v605_v60 = vadd.f32 %v2288_v33, %v604_v59 }
 0x168   : > { %v1581_v62 = vpop.f32.mrf.mxu0  ;;  %v1788_v63 = vpop.eup %1787 }
 0x169   : > { %v616_v0 = vadd.f32 %v1581_v62, %v2288_v33  ;;  %1801 = vtanh.f32 %v605_v60  ;;  %v916_v60 = vunpack.c.h.bf16 %v2222_v4 }
 0x16a   : > { %v1790_v1 = vpop.eup %1789  ;;  %v607_v3 = vpop.f32.mrf.mxu0 }
 0x16b   : > { %v1792_v5 = vpop.eup %1791  ;;  %v608_v6 = vadd.f32 %v2288_v33, %v607_v3  ;;  %v675_v7 = vpack.c.bf16 %v1790_v1, %v1786_v61  ;;  %1803 = vtanh.f32 %v616_v0  ;;  %v921_v3 = vunpack.c.l.bf16 %v2234_v13 }
 0x16c   : > { %v1584_v8 = vpop.f32.mrf.mxu0  ;;  %v676_v9 = vpack.c.bf16 %v1788_v63, %v1792_v5 }
 0x16d   : > { %1805 = vtanh.f32 %v608_v6  ;;  %1618 = vmatprep.mubr.bf16.mxu1 %v675_v7  ;;  %v629_v32 = vadd.f32 %v1584_v8, %v2288_v33  ;;  %v919_v7 = vunpack.c.l.bf16 %v2229_v12  ;;  %v922_v8 = vunpack.c.h.bf16 %v2234_v13 }
 0x16e   : > { %1807 = vtanh.f32 %v613_v2  ;;  %v620_v10 = vpop.f32.mrf.mxu0  ;;  %1619 = vmatmul.mubr.bf16.gmra.mxu1 %v676_v9  ;;  %v1794_v27 = vpop.eup %1793 }
 0x16f   : > { %v621_v26 = vadd.f32 %v2288_v33, %v620_v10 }
 0x170   : > { %v1585_v28 = vpop.f32.mrf.mxu0  ;;  %v1796_v29 = vpop.eup %1795 }
 0x171   : > { %v632_v30 = vadd.f32 %v1585_v28, %v2288_v33  ;;  %1809 = vtanh.f32 %v621_v26 }
 0x172   : > { %v1798_v31 = vpop.eup %1797  ;;  %v623_v34 = vpop.f32.mrf.mxu0 }
 0x173   : > { %v1800_v35 = vpop.eup %1799  ;;  %v624_v36 = vadd.f32 %v2288_v33, %v623_v34  ;;  %v677_v37 = vpack.c.bf16 %v1798_v31, %v1794_v27  ;;  %1811 = vtanh.f32 %v632_v30  ;;  %v920_v27 = vunpack.c.h.bf16 %v2229_v12 }
 0x174   : > { %v678_v38 = vpack.c.bf16 %v1796_v29, %v1800_v35  ;;  %v925_v34 = vunpack.c.l.bf16 %v2242_v15 }
 0x175   : > { %1813 = vtanh.f32 %v624_v36  ;;  %1622 = vmatprep.mubr.bf16.mxu1 %v677_v37  ;;  %v923_v37 = vunpack.c.l.bf16 %v2237_v14 }
 0x176   : > { %1815 = vtanh.f32 %v629_v32  ;;  %1623 = vmatmul.mubr.bf16.gmra.mxu1 %v678_v38  ;;  %v1802_v39 = vpop.eup %1801  ;;  %v926_v38 = vunpack.c.h.bf16 %v2242_v15  ;;  %v929_v15 = vunpack.c.l.bf16 %v2250_v17 }
 0x178   : > { %v1804_v40 = vpop.eup %1803 }
 0x17a   : > { %v1806_v41 = vpop.eup %1805 }
 0x17b   : > { %v1808_v42 = vpop.eup %1807  ;;  %v679_v43 = vpack.c.bf16 %v1806_v41, %v1802_v39 }
 0x17c   : > { %v680_v44 = vpack.c.bf16 %v1804_v40, %v1808_v42 }
 0x17d   : > { %1626 = vmatprep.mubr.bf16.mxu1 %v679_v43  ;;  %v924_v43 = vunpack.c.h.bf16 %v2237_v14 }
 0x17e   : > { %1627 = vmatmul.mubr.bf16.gmra.mxu1 %v680_v44  ;;  %v1810_v45 = vpop.eup %1809 }
 0x180   : > { %v1812_v46 = vpop.eup %1811 }
 0x182   : > { %v1814_v47 = vpop.eup %1813 }
 0x183   : > { %v1816_v48 = vpop.eup %1815  ;;  %v681_v33 = vpack.c.bf16 %v1814_v47, %v1810_v45 }
 0x184   : > { %v682_v49 = vpack.c.bf16 %v1812_v46, %v1816_v48 }
 0x185   : > { %1630 = vmatprep.mubr.bf16.mxu1 %v681_v33 }
 0x186   : > { %1631 = vmatmul.mubr.bf16.gmra.mxu1 %v682_v49 }
 0x20e   : > { %v1604_v51 = vpop.f32.mrf.mxu1 }
 0x20f   : > { %v797_v53 = vadd.f32 %v1604_v51, %v2325_v50 }
 0x210   : > { %v788_v55 = vpop.f32.mrf.mxu1 }
 0x211   : > { %v789_v56 = vadd.f32 %v2325_v50, %v788_v55  ;;  %v949_v58 = vadd.f32 %v917_v52, %v797_v53 }
 0x212   : > { %v1605_v59 = vpop.f32.mrf.mxu1 }
 0x213   : > { %v800_v61 = vadd.f32 %v1605_v59, %v2325_v50  ;;  %v947_v62 = vadd.f32 %v915_v54, %v789_v56  ;;  %1817 = vtanh.f32 %v949_v58  ;;  %v927_v56 = vunpack.c.l.bf16 %v2245_v16 }
 0x214   : > { %v791_v63 = vpop.f32.mrf.mxu1  ;;  %v930_v58 = vunpack.c.h.bf16 %v2250_v17 }
 0x215   : > { %v950_v0 = vadd.f32 %v918_v57, %v800_v61  ;;  %v792_v1 = vadd.f32 %v2325_v50, %v791_v63  ;;  %v928_v63 = vunpack.c.h.bf16 %v2245_v16 }
 0x216   : > { %v1608_v2 = vpop.f32.mrf.mxu1 }
 0x217   : > { %1819 = vtanh.f32 %v950_v0  ;;  %v948_v5 = vadd.f32 %v916_v60, %v792_v1  ;;  %v813_v6 = vadd.f32 %v1608_v2, %v2325_v50 }
 0x218   : > { %1821 = vtanh.f32 %v947_v62  ;;  %v804_v11 = vpop.f32.mrf.mxu1 }
 0x219   : > { %1823 = vtanh.f32 %v948_v5  ;;  %v805_v4 = vadd.f32 %v2325_v50, %v804_v11  ;;  %v953_v9 = vadd.f32 %v921_v3, %v813_v6 }
 0x21a   : > { %v1609_v10 = vpop.f32.mrf.mxu1 }
 0x21b   : > { %v816_v26 = vadd.f32 %v1609_v10, %v2325_v50  ;;  %v951_v28 = vadd.f32 %v919_v7, %v805_v4  ;;  %1825 = vtanh.f32 %v953_v9  ;;  %v933_v4 = vunpack.c.l.bf16 %v2258_v19 }
 0x21c   : > { %v807_v29 = vpop.f32.mrf.mxu1 }
 0x21d   : > { %v954_v30 = vadd.f32 %v922_v8, %v816_v26  ;;  %v808_v31 = vadd.f32 %v2325_v50, %v807_v29  ;;  %v931_v26 = vunpack.c.l.bf16 %v2253_v18 }
 0x21e   : > { %v1612_v32 = vpop.f32.mrf.mxu1 }
 0x21f   : > { %1827 = vtanh.f32 %v954_v30  ;;  %v952_v35 = vadd.f32 %v920_v27, %v808_v31  ;;  %v829_v36 = vadd.f32 %v1612_v32, %v2325_v50 }
 0x220   : > { %1829 = vtanh.f32 %v951_v28  ;;  %v820_v13 = vpop.f32.mrf.mxu1  ;;  %v1818_v41 = vpop.eup %1817  ;;  %v934_v28 = vunpack.c.h.bf16 %v2258_v19 }
 0x221   : > { %1831 = vtanh.f32 %v952_v35  ;;  %v821_v12 = vadd.f32 %v2325_v50, %v820_v13  ;;  %v957_v39 = vadd.f32 %v925_v34, %v829_v36  ;;  %v932_v34 = vunpack.c.h.bf16 %v2253_v18 }
 0x222   : > { %v1613_v40 = vpop.f32.mrf.mxu1 }
 0x223   : > { %v832_v42 = vadd.f32 %v1613_v40, %v2325_v50  ;;  %v955_v45 = vadd.f32 %v923_v37, %v821_v12  ;;  %1833 = vtanh.f32 %v957_v39 }
 0x224   : > { %v1820_v44 = vpop.eup %1819  ;;  %v823_v46 = vpop.f32.mrf.mxu1 }
 0x225   : > { %v1822_v47 = vpop.eup %1821  ;;  %v1403_v48 = vpack.c.bf16 %v1820_v44, %v1818_v41  ;;  %v958_v33 = vadd.f32 %v926_v38, %v832_v42  ;;  %v824_v49 = vadd.f32 %v2325_v50, %v823_v46  ;;  %v937_v41 = vunpack.c.l.bf16 %v2266_v21 }
 0x226   : > { %v1824_v51 = vpop.eup %1823  ;;  %v1616_v52 = vpop.f32.mrf.mxu1 }
 0x227   : > { %1475 = vst [vmem:[%s2354_s12 + $0x8] sm:$0xff] %v1403_v48   ;;  %v1398_v14 = vpack.c.bf16 %v1824_v51, %v1822_v47  ;;  %1835 = vtanh.f32 %v958_v33  ;;  %v956_v53 = vadd.f32 %v924_v43, %v824_v49  ;;  %v845_v54 = vadd.f32 %v1616_v52, %v2325_v50 }
 0x228   : > { %1837 = vtanh.f32 %v955_v45  ;;  %v836_v55 = vpop.f32.mrf.mxu1  ;;  %v1826_v61 = vpop.eup %1825  ;;  %v935_v45 = vunpack.c.l.bf16 %v2261_v20  ;;  %v938_v47 = vunpack.c.h.bf16 %v2266_v21  ;;  %v936_v52 = vunpack.c.h.bf16 %v2261_v20 }
 0x229   : > { %1399 = vst [vmem:[%s2354_s12] sm:$0xff] %v1398_v14   ;;  %1839 = vtanh.f32 %v956_v53  ;;  %v837_v57 = vadd.f32 %v2325_v50, %v836_v55  ;;  %v961_v59 = vadd.f32 %v929_v15, %v845_v54 }
 0x22a   : > { %v1617_v60 = vpop.f32.mrf.mxu1 }
 0x22b   : > { %v848_v62 = vadd.f32 %v1617_v60, %v2325_v50  ;;  %v959_v1 = vadd.f32 %v927_v56, %v837_v57  ;;  %1841 = vtanh.f32 %v961_v59  ;;  %v941_v59 = vunpack.c.l.bf16 %v2274_v23 }
 0x22c   : > { %v1828_v0 = vpop.eup %1827  ;;  %v839_v2 = vpop.f32.mrf.mxu1 }
 0x22d   : > { %v1830_v3 = vpop.eup %1829  ;;  %v1413_v5 = vpack.c.bf16 %v1828_v0, %v1826_v61  ;;  %v962_v6 = vadd.f32 %v930_v58, %v848_v62  ;;  %v840_v11 = vadd.f32 %v2325_v50, %v839_v2 }
 0x22e   : > { %v1832_v7 = vpop.eup %1831  ;;  %v1620_v17 = vpop.f32.mrf.mxu1 }
 0x22f   : > { %1477 = vst [vmem:[%s2354_s12 + $0x18] sm:$0xff] %v1413_v5   ;;  %v1408_v8 = vpack.c.bf16 %v1832_v7, %v1830_v3  ;;  %1843 = vtanh.f32 %v962_v6  ;;  %v960_v9 = vadd.f32 %v928_v63, %v840_v11  ;;  %v861_v16 = vadd.f32 %v1620_v17, %v2325_v50 }
 0x230   : > { %1845 = vtanh.f32 %v959_v1  ;;  %v852_v10 = vpop.f32.mrf.mxu1  ;;  %v1834_v31 = vpop.eup %1833  ;;  %v939_v63 = vunpack.c.l.bf16 %v2269_v22  ;;  %v942_v1 = vunpack.c.h.bf16 %v2274_v23  ;;  %v940_v11 = vunpack.c.h.bf16 %v2269_v22 }
 0x231   : > { %1476 = vst [vmem:[%s2354_s12 + $0x10] sm:$0xff] %v1408_v8   ;;  %1847 = vtanh.f32 %v960_v9  ;;  %v853_v27 = vadd.f32 %v2325_v50, %v852_v10  ;;  %v965_v29 = vadd.f32 %v933_v4, %v861_v16 }
 0x232   : > { %v1621_v30 = vpop.f32.mrf.mxu1 }
 0x233   : > { %v864_v32 = vadd.f32 %v1621_v30, %v2325_v50  ;;  %v963_v36 = vadd.f32 %v931_v26, %v853_v27  ;;  %1849 = vtanh.f32 %v965_v29  ;;  %v945_v27 = vunpack.c.l.bf16 %v2282_v25 }
 0x234   : > { %v1836_v35 = vpop.eup %1835  ;;  %v855_v13 = vpop.f32.mrf.mxu1 }
 0x235   : > { %v1838_v37 = vpop.eup %1837  ;;  %v1423_v12 = vpack.c.bf16 %v1836_v35, %v1834_v31  ;;  %v966_v38 = vadd.f32 %v934_v28, %v864_v32  ;;  %v856_v39 = vadd.f32 %v2325_v50, %v855_v13  ;;  %v943_v31 = vunpack.c.l.bf16 %v2277_v24 }
 0x236   : > { %v1840_v40 = vpop.eup %1839  ;;  %v1624_v19 = vpop.f32.mrf.mxu1 }
 0x237   : > { %1479 = vst [vmem:[%s2354_s12 + $0x28] sm:$0xff] %v1423_v12   ;;  %v1418_v42 = vpack.c.bf16 %v1840_v40, %v1838_v37  ;;  %1851 = vtanh.f32 %v966_v38  ;;  %v964_v43 = vadd.f32 %v932_v34, %v856_v39  ;;  %v877_v18 = vadd.f32 %v1624_v19, %v2325_v50 }
 0x238   : > { %1853 = vtanh.f32 %v963_v36  ;;  %v868_v44 = vpop.f32.mrf.mxu1  ;;  %v1842_v49 = vpop.eup %1841  ;;  %v946_v34 = vunpack.c.h.bf16 %v2282_v25  ;;  %v944_v12 = vunpack.c.h.bf16 %v2277_v24 }
 0x239   : > { %1478 = vst [vmem:[%s2354_s12 + $0x20] sm:$0xff] %v1418_v42   ;;  %1855 = vtanh.f32 %v964_v43  ;;  %v869_v46 = vadd.f32 %v2325_v50, %v868_v44  ;;  %v969_v48 = vadd.f32 %v937_v41, %v877_v18 }
 0x23a   : > { %v1625_v33 = vpop.f32.mrf.mxu1 }
 0x23b   : > { %v880_v51 = vadd.f32 %v1625_v33, %v2325_v50  ;;  %v967_v14 = vadd.f32 %v935_v45, %v869_v46  ;;  %1857 = vtanh.f32 %v969_v48 }
 0x23c   : > { %v1844_v15 = vpop.eup %1843  ;;  %v871_v53 = vpop.f32.mrf.mxu1 }
 0x23d   : > { %v1846_v54 = vpop.eup %1845  ;;  %v1433_v55 = vpack.c.bf16 %v1844_v15, %v1842_v49  ;;  %v970_v56 = vadd.f32 %v938_v47, %v880_v51  ;;  %v872_v57 = vadd.f32 %v2325_v50, %v871_v53 }
 0x23e   : > { %v1848_v58 = vpop.eup %1847  ;;  %v1628_v21 = vpop.f32.mrf.mxu1 }
 0x23f   : > { %1481 = vst [vmem:[%s2354_s12 + $0x38] sm:$0xff] %v1433_v55   ;;  %v1428_v60 = vpack.c.bf16 %v1848_v58, %v1846_v54  ;;  %1859 = vtanh.f32 %v970_v56  ;;  %v968_v61 = vadd.f32 %v936_v52, %v872_v57  ;;  %v893_v20 = vadd.f32 %v1628_v21, %v2325_v50 }
 0x240   : > { %1861 = vtanh.f32 %v967_v14  ;;  %v884_v62 = vpop.f32.mrf.mxu1  ;;  %v1850_v5 = vpop.eup %1849 }
 0x241   : > { %1480 = vst [vmem:[%s2354_s12 + $0x30] sm:$0xff] %v1428_v60   ;;  %1863 = vtanh.f32 %v968_v61  ;;  %v885_v0 = vadd.f32 %v2325_v50, %v884_v62  ;;  %v973_v2 = vadd.f32 %v941_v59, %v893_v20 }
 0x242   : > { %v1629_v3 = vpop.f32.mrf.mxu1 }
 0x243   : > { %v896_v6 = vadd.f32 %v1629_v3, %v2325_v50  ;;  %v971_v17 = vadd.f32 %v939_v63, %v885_v0  ;;  %1865 = vtanh.f32 %v973_v2 }
 0x244   : > { %v1852_v7 = vpop.eup %1851  ;;  %v887_v4 = vpop.f32.mrf.mxu1 }
 0x245   : > { %v1854_v8 = vpop.eup %1853  ;;  %v1443_v9 = vpack.c.bf16 %v1852_v7, %v1850_v5  ;;  %v974_v16 = vadd.f32 %v942_v1, %v896_v6  ;;  %v888_v10 = vadd.f32 %v2325_v50, %v887_v4 }
 0x246   : > { %v1856_v26 = vpop.eup %1855  ;;  %v1632_v23 = vpop.f32.mrf.mxu1 }
 0x247   : > { %1483 = vst [vmem:[%s2354_s12 + $0x48] sm:$0xff] %v1443_v9   ;;  %v1438_v28 = vpack.c.bf16 %v1856_v26, %v1854_v8  ;;  %1867 = vtanh.f32 %v974_v16  ;;  %v972_v29 = vadd.f32 %v940_v11, %v888_v10  ;;  %v909_v22 = vadd.f32 %v1632_v23, %v2325_v50 }
 0x248   : > { %1869 = vtanh.f32 %v971_v17  ;;  %v900_v30 = vpop.f32.mrf.mxu1  ;;  %v1858_v13 = vpop.eup %1857 }
 0x249   : > { %1482 = vst [vmem:[%s2354_s12 + $0x40] sm:$0xff] %v1438_v28   ;;  %1871 = vtanh.f32 %v972_v29  ;;  %v901_v32 = vadd.f32 %v2325_v50, %v900_v30  ;;  %v977_v35 = vadd.f32 %v945_v27, %v909_v22 }
 0x24a   : > { %v1633_v36 = vpop.f32.mrf.mxu1 }
 0x24b   : > { %v912_v37 = vadd.f32 %v1633_v36, %v2325_v50  ;;  %v975_v39 = vadd.f32 %v943_v31, %v901_v32  ;;  %1873 = vtanh.f32 %v977_v35 }
 0x24c   : > { %v1860_v38 = vpop.eup %1859  ;;  %v903_v40 = vpop.f32.mrf.mxu1 }
 0x24d   : > { %v1862_v19 = vpop.eup %1861  ;;  %v1453_v41 = vpack.c.bf16 %v1860_v38, %v1858_v13  ;;  %v978_v42 = vadd.f32 %v946_v34, %v912_v37  ;;  %v904_v43 = vadd.f32 %v2325_v50, %v903_v40 }
 0x24e   : > { %v1864_v18 = vpop.eup %1863 }
 0x24f   : > { %1485 = vst [vmem:[%s2354_s12 + $0x58] sm:$0xff] %v1453_v41   ;;  %v1448_v25 = vpack.c.bf16 %v1864_v18, %v1862_v19  ;;  %1875 = vtanh.f32 %v978_v42  ;;  %v976_v44 = vadd.f32 %v944_v12, %v904_v43 }
 0x250   : > { %1877 = vtanh.f32 %v975_v39  ;;  %v1866_v24 = vpop.eup %1865 }
 0x251   : > { %1484 = vst [vmem:[%s2354_s12 + $0x50] sm:$0xff] %v1448_v25   ;;  %1879 = vtanh.f32 %v976_v44 }
 0x254   : > { %v1868_v45 = vpop.eup %1867 }
 0x255   : > { %v1870_v46 = vpop.eup %1869  ;;  %v1463_v47 = vpack.c.bf16 %v1868_v45, %v1866_v24 }
 0x256   : > { %v1872_v48 = vpop.eup %1871 }
 0x257   : > { %1487 = vst [vmem:[%s2354_s12 + $0x68] sm:$0xff] %v1463_v47   ;;  %v1458_v50 = vpack.c.bf16 %v1872_v48, %v1870_v46 }
 0x258   : > { %v1874_v33 = vpop.eup %1873 }
 0x259   : > { %1486 = vst [vmem:[%s2354_s12 + $0x60] sm:$0xff] %v1458_v50  }
 0x25c   : > { %v1876_v49 = vpop.eup %1875 }
 0x25d   : > { %v1878_v51 = vpop.eup %1877  ;;  %v1473_v52 = vpack.c.bf16 %v1876_v49, %v1874_v33 }
 0x25e   : > { %v1880_v15 = vpop.eup %1879 }
 0x25f   : > { %1489 = vst [vmem:[%s2354_s12 + $0x78] sm:$0xff] %v1473_v52   ;;  %v1468_v14 = vpack.c.bf16 %v1880_v15, %v1878_v51 }
 0x261   : > { %1488 = vst [vmem:[%s2354_s12 + $0x70] sm:$0xff] %v1468_v14  }
 0x262   : > { %1974 = shalt.err (!%p1971_p3)
}
 0x263   : > { %s1975_s13 = scalar_lea.hbm %s2414_s11, 2048  ;;  %s1979_s9 = scalar_lea.hbm %s2466_s5, 4096 }
 0x264   : > { %p1976_p11 = scmp.ne.s32.totalorder %s2414_s11, %s1975_s13  ;;  %p1980_p4 = scmp.lt.s32.totalorder %s2414_s11, %s2466_s5 }
 0x265   : > { %p1981_p6 = scmp.lt.s32.totalorder %s1979_s9, %s1975_s13 }
 0x266   : > { %p1977_p9 = pnand %p1976_p11, %p2483_p2 }
 0x267   : > { %p1982_p8 = por %p1981_p6, %p1980_p4 }
 0x268   : > { %p1978_p1 = pneg %p1977_p9 }
 0x26a   : > { %p1983_p5 = pnand %p1982_p8, %p1978_p1 }
 0x26c   : > { %1986 = shalt.err (!%p1983_p5)
}
 0x26d   : > { %s2037_s14 = smov 64   ;;  %s2038_s7 = smov 4  }
 0x26e   : > { %1644 = dma.vmem_to_hbm [thread:$0]  (%p2483_p2), %s2416_s6, 2048, %s2414_s11, %s1172_s17, %s2037_s14, %s2037_s14, %s2038_s7  }
 0x26f PF: > { %s1200_s28 = sand.u32 1, %s2017_s18   ;;  %p2484_p7 = scmp.ne.s32.totalorder %s2473_s25, 0 }
 0x270   : > { %p2485_p12 = scmp.ge.s32.totalorder %s2029_s21, 2  ;;  %s1201_s22 = scalar_lea.sflag [#allocation4], %s1200_s28 }
 0x272   : > { %p1658_p13 = pnand %p2485_p12, %p2484_p7 }
 0x274   : > { %p1659_p0 = pneg %p1658_p13 }
 0x276   : > { %2012 = dma.done.wait (%p1659_p0), %s1201_s22, 2048  }
 0x277   : > { %2014 = vsyncadd (%p1659_p0), %s1201_s22, 4294965248  ;;  %p19_p10 = scmp.ge.s32.totalorder %s2147_s15, 4   ;;  %s2486_s18 = smov %s2021_s19 }
 0x278   : > { %s2487_s19 = smov %s2025_s20  ;;  %s2488_s20 = smov %s2163_s27 }
 0x279   : > { %s2489_s21 = smov %s2147_s15  ;;  %21 = sbr.rel (!%p19_p10) target bundleno = 6 (0x6), region = 93 }
 0x27e   :  { %1206 = vsyncpa [#allocation3], 1 }
 0x27f   :  { %1208 = vsyncpa [#allocation3 + $0x1], 1 }
 0x280   :  { %1209 = vsyncpa [#allocation6], 1 }
 0x281   :  { %1210 = vsyncpa [#allocation4], 1 }
 0x282   :  { %1212 = vsyncpa [#allocation4 + $0x1], 1 }

</bundles_post_ra>
